<compile_context>
chip_gen: v7x
topology: tpu7x:2x2x1
jax: 0.10.0
libtpu: 0.0.40
codegen_flags: <defaults>
</compile_context>

<pallas_src>
import jax
import jax.numpy as jnp
import numpy as np
from jax.experimental import pallas as pl
from jax.experimental.pallas import tpu as pltpu

OPTIMIZE_LIGHT = True          # fused kernel is specialized for this config
CAMERA_SPACE_LIGHT = True
LIGHT_REG_WEIGHT = 0.005


def trainer_kernel(mv_ref, env_ref, dirs_ref, pred_ref, tgt_ref,
                   mip_ref, dirs_out_ref, loss_ref):
    # --- light.build_mips(): first 2x2 avg-pool mip level (exact, VPU only) ---
    # env layout: (C, 4, F*H/2*W/2); axis 1 holds the four 2x2-pool taps, last dim is
    # lane-dense (384 lanes) so the mip store is unmasked full-vreg vst's.
    e = env_ref[...]
    mip_ref[...] = 0.25 * jnp.sum(e, axis=1)                 # (C, F*H/2*W/2)

    # --- light white-balance regularizer: mean |env - mean_c(env)| (same env load) ---
    white = jnp.mean(e, axis=0, keepdims=True)               # (1, 4, F*H/2*W/2)
    reg = jnp.sum(jnp.abs(e - white)) * (1.0 / float(e.size))

    # --- light.xfm(target['mv']): rotate light dirs by mv[:3,:3], all B in one shot ---
    d = dirs_ref[...]                                        # (3, N)
    m = mv_ref[...]                                          # (B*3, 3)
    dirs_out_ref[...] = (m[:, 0:1] * d[0:1, :]
                         + m[:, 1:2] * d[1:2, :]
                         + m[:, 2:3] * d[2:3, :])            # one dense (B*3, N) store

    # --- geometry.tick image loss: mean(log(|rendered - target| + 1)) ---
    diff = jnp.abs(pred_ref[...] - tgt_ref[...])             # (B*C, H*W), lane-dense
    img_loss = jnp.sum(jnp.log(diff + 1.0)) * (1.0 / float(diff.size))

    # both scalars in one lane-packed (1, 2) store: [img_loss, reg]
    lane = jax.lax.broadcasted_iota(jnp.int32, (1, 2), 1)
    loss_ref[...] = jnp.where(lane == 0, img_loss, reg)


def trainer_forward(env_base, light_dirs, target, rendered_img, it):
    del it  # nvdiffrec uses `it` only for loss scheduling
    F, C, H, W = env_base.shape
    H2, W2 = H // 2, W // 2
    NPIX = F * H2 * W2
    mv = target["mv"]
    B = mv.shape[0]
    N = light_dirs.shape[1]
    Bi, Ci, Hi, Wi = rendered_img.shape

    # Layout plumbing (cheap XLA reshapes/transposes outside the kernel):
    #   cubemap -> (C, 4, F*H/2*W/2): the four 2x2-pool taps land on axis 1 so the mip is
    #   a pure-VPU sum; color on axis 0 so the white-balance reg is a leading-axis mean;
    #   all spatial dims collapse onto the lane axis (384 lanes => lane-dense load/store).
    #   (Both the mip average and the |env-white| sum are invariant to this permutation.)
    env_p = (env_base.reshape(F, C, H2, 2, W2, 2)
             .transpose(1, 3, 5, 0, 2, 4)
             .reshape(C, 4, NPIX))
    mv33 = mv[:, :3, :3].reshape(B * 3, 3)
    pred2d = rendered_img.reshape(Bi * Ci, Hi * Wi)          # lane-dense (H*W = 256)
    tgt2d = target["img"].reshape(Bi * Ci, Hi * Wi)

    mip_p, dirs2d, losses = pl.pallas_call(
        trainer_kernel,
        out_shape=(
            jax.ShapeDtypeStruct((C, NPIX), jnp.float32),
            jax.ShapeDtypeStruct((B * 3, N), jnp.float32),
            jax.ShapeDtypeStruct((1, 2), jnp.float32),
        ),
        grid=(1,),
        in_specs=[
            pl.BlockSpec((B * 3, 3), lambda i: (0, 0)),
            pl.BlockSpec((C, 4, NPIX), lambda i: (0, 0, 0)),
            pl.BlockSpec((3, N), lambda i: (0, 0)),
            pl.BlockSpec((Bi * Ci, Hi * Wi), lambda i: (0, 0)),
            pl.BlockSpec((Bi * Ci, Hi * Wi), lambda i: (0, 0)),
        ],
        out_specs=(
            pl.BlockSpec((C, NPIX), lambda i: (0, 0)),
            pl.BlockSpec((B * 3, N), lambda i: (0, 0)),
            pl.BlockSpec((1, 2), lambda i: (0, 0)),
        ),
        compiler_params=pltpu.CompilerParams(
            dimension_semantics=("arbitrary",)),
    )(mv33, env_p, light_dirs, pred2d, tgt2d)

    # undo the layout plumbing
    mips = (mip_p.reshape(C, F, H2, W2).transpose(1, 0, 2, 3)
            if OPTIMIZE_LIGHT else None)
    dirs_cam = dirs2d.reshape(B, 3, N) if CAMERA_SPACE_LIGHT else None
    img_loss = losses[0, 0]
    reg_loss = losses[0, 1]
    total = img_loss + LIGHT_REG_WEIGHT * reg_loss
    return total, (mips, dirs_cam, img_loss, reg_loss)


if __name__ == "__main__":
    key = jax.random.PRNGKey(0)
    k1, k2, k3, k4, k5 = jax.random.split(key, 5)

    B, H, W = 2, 16, 16
    RES = 16                      # cubemap face resolution
    N_DIRS = 6 * RES * RES        # 1536: one direction per cubemap texel

    env_base = jnp.abs(jax.random.normal(k1, (6, 3, RES, RES), jnp.float32)) * 0.5
    target_img = jax.nn.sigmoid(jax.random.normal(k2, (B, 3, H, W), jnp.float32))
    rendered_img = jax.nn.sigmoid(jax.random.normal(k3, (B, 3, H, W), jnp.float32))
    mv = jax.random.normal(k4, (B, 4, 4), jnp.float32)
    light_dirs = jax.random.normal(k5, (3, N_DIRS), jnp.float32)
    light_dirs = light_dirs / jnp.linalg.norm(light_dirs, axis=0, keepdims=True)

    target = {"mv": mv, "img": target_img}

    total, (mips, dirs_cam, img_loss, reg_loss) = trainer_forward(
        env_base, light_dirs, target, rendered_img, it=0)
    jax.block_until_ready((total, mips, dirs_cam, img_loss, reg_loss))

    # ----- reference checks (plain JAX) -----
    mip_ref = env_base.reshape(6, 3, RES // 2, 2, RES // 2, 2).mean(axis=(3, 5))
    dirs_ref = jnp.einsum("bij,jn->bin", mv[:, :3, :3], light_dirs,
                          precision=jax.lax.Precision.HIGHEST)
    img_loss_ref = jnp.mean(jnp.log(jnp.abs(rendered_img - target_img) + 1.0))
    reg_ref = jnp.mean(jnp.abs(env_base - jnp.mean(env_base, axis=1, keepdims=True)))

    # mip is an exact VPU average (no MXU rounding) -> tight tolerance
    np.testing.assert_allclose(np.asarray(mips), np.asarray(mip_ref),
                               rtol=1e-5, atol=1e-6)
    np.testing.assert_allclose(np.asarray(dirs_cam), np.asarray(dirs_ref),
                               rtol=1e-5, atol=1e-5)
    np.testing.assert_allclose(float(img_loss), float(img_loss_ref),
                               rtol=1e-4, atol=1e-6)
    np.testing.assert_allclose(float(reg_loss), float(reg_ref),
                               rtol=1e-4, atol=1e-6)

    print("KERNEL_OK")
</pallas_src>

<mosaic_0001>
module attributes {stable_mosaic.version = 11 : i64} {
  func.func @trainer_kernel(%arg0: i32, %arg1: memref<6x3xf32, #tpu.memory_space<vmem>>, %arg2: memref<3x4x384xf32, #tpu.memory_space<vmem>>, %arg3: memref<3x1536xf32, #tpu.memory_space<vmem>>, %arg4: memref<6x256xf32, #tpu.memory_space<vmem>>, %arg5: memref<6x256xf32, #tpu.memory_space<vmem>>, %arg6: memref<3x384xf32, #tpu.memory_space<vmem>>, %arg7: memref<6x1536xf32, #tpu.memory_space<vmem>>, %arg8: memref<1x2xf32, #tpu.memory_space<vmem>>) attributes {dimension_semantics = [#tpu.dimension_semantics<arbitrary>], iteration_bounds = array<i64: 1>, scalar_prefetch = 0 : i64, scratch_operands = 0 : i64, tpu.core_type = #tpu.core_type<tc>, window_params = [{pipeline_mode = #tpu.pipeline_mode<synchronous>, transform_indices = @transform_0, window_bounds = array<i64: 6, 3>}, {pipeline_mode = #tpu.pipeline_mode<synchronous>, transform_indices = @transform_1, window_bounds = array<i64: 3, 4, 384>}, {pipeline_mode = #tpu.pipeline_mode<synchronous>, transform_indices = @transform_2, window_bounds = array<i64: 3, 1536>}, {pipeline_mode = #tpu.pipeline_mode<synchronous>, transform_indices = @transform_3, window_bounds = array<i64: 6, 256>}, {pipeline_mode = #tpu.pipeline_mode<synchronous>, transform_indices = @transform_4, window_bounds = array<i64: 6, 256>}, {pipeline_mode = #tpu.pipeline_mode<synchronous>, transform_indices = @transform_5, window_bounds = array<i64: 3, 384>}, {pipeline_mode = #tpu.pipeline_mode<synchronous>, transform_indices = @transform_6, window_bounds = array<i64: 6, 1536>}, {pipeline_mode = #tpu.pipeline_mode<synchronous>, transform_indices = @transform_7, window_bounds = array<i64: 1, 2>}]} {
    %c0 = arith.constant 0 : index
    %c0_0 = arith.constant 0 : index
    %c0_1 = arith.constant 0 : index
    %0 = vector.load %arg2[%c0, %c0_0, %c0_1] : memref<3x4x384xf32, #tpu.memory_space<vmem>>, vector<3x4x384xf32>
    %cst = arith.constant dense<0.000000e+00> : vector<3x384xf32>
    %1 = vector.multi_reduction <add>, %0, %cst [1] : vector<3x4x384xf32> to vector<3x384xf32>
    %cst_2 = arith.constant 2.500000e-01 : f32
    %2 = vector.broadcast %cst_2 : f32 to vector<3x384xf32>
    %3 = arith.mulf %2, %1 : vector<3x384xf32>
    %c0_3 = arith.constant 0 : index
    %c0_4 = arith.constant 0 : index
    %4 = vector.load %arg6[%c0_3, %c0_4] : memref<3x384xf32, #tpu.memory_space<vmem>>, vector<3x384xf32>
    tpu.vector_store %arg6[%c0_3, %c0_4], %3 {strides = array<i32>} : memref<3x384xf32, #tpu.memory_space<vmem>>, vector<3x384xf32>,
    %cst_5 = arith.constant dense<0.000000e+00> : vector<4x384xf32>
    %5 = vector.multi_reduction <add>, %0, %cst_5 [0] : vector<3x4x384xf32> to vector<4x384xf32>
    %6 = vector.shape_cast %5 : vector<4x384xf32> to vector<1x4x384xf32>
    %cst_6 = arith.constant 3.000000e+00 : f32
    %7 = vector.broadcast %cst_6 : f32 to vector<1x4x384xf32>
    %8 = arith.divf %6, %7 : vector<1x4x384xf32>
    %9 = vector.broadcast %8 : vector<1x4x384xf32> to vector<3x4x384xf32>
    %10 = arith.subf %0, %9 : vector<3x4x384xf32>
    %11 = math.absf %10 : vector<3x4x384xf32>
    %12 = vector.shape_cast %11 : vector<3x4x384xf32> to vector<1x3x4x384xf32>
    %cst_7 = arith.constant dense<0.000000e+00> : vector<1xf32>
    %13 = vector.multi_reduction <add>, %12, %cst_7 [1, 2, 3] : vector<1x3x4x384xf32> to vector<1xf32>
    %14 = vector.shape_cast %13 : vector<1xf32> to vector<1x1x1x1xf32>
    %15 = vector.extract %14[0, 0, 0, 0] : f32 from vector<1x1x1x1xf32>
    %cst_8 = arith.constant 2.17013891E-4 : f32
    %16 = arith.mulf %15, %cst_8 : f32
    %c0_9 = arith.constant 0 : index
    %c0_10 = arith.constant 0 : index
    %17 = vector.load %arg3[%c0_9, %c0_10] : memref<3x1536xf32, #tpu.memory_space<vmem>>, vector<3x1536xf32>
    %c0_11 = arith.constant 0 : index
    %c0_12 = arith.constant 0 : index
    %18 = vector.load %arg1[%c0_11, %c0_12] : memref<6x3xf32, #tpu.memory_space<vmem>>, vector<6x3xf32>
    %19 = vector.extract_strided_slice %18 {offsets = [0, 0], sizes = [6, 1], strides = [1, 1]} : vector<6x3xf32> to vector<6x1xf32>
    %20 = vector.extract_strided_slice %17 {offsets = [0, 0], sizes = [1, 1536], strides = [1, 1]} : vector<3x1536xf32> to vector<1x1536xf32>
    %21 = vector.broadcast %19 : vector<6x1xf32> to vector<6x1536xf32>
    %22 = vector.broadcast %20 : vector<1x1536xf32> to vector<6x1536xf32>
    %23 = arith.mulf %21, %22 : vector<6x1536xf32>
    %24 = vector.extract_strided_slice %18 {offsets = [0, 1], sizes = [6, 1], strides = [1, 1]} : vector<6x3xf32> to vector<6x1xf32>
    %25 = vector.extract_strided_slice %17 {offsets = [1, 0], sizes = [1, 1536], strides = [1, 1]} : vector<3x1536xf32> to vector<1x1536xf32>
    %26 = vector.broadcast %24 : vector<6x1xf32> to vector<6x1536xf32>
    %27 = vector.broadcast %25 : vector<1x1536xf32> to vector<6x1536xf32>
    %28 = arith.mulf %26, %27 : vector<6x1536xf32>
    %29 = arith.addf %23, %28 : vector<6x1536xf32>
    %30 = vector.extract_strided_slice %18 {offsets = [0, 2], sizes = [6, 1], strides = [1, 1]} : vector<6x3xf32> to vector<6x1xf32>
    %31 = vector.extract_strided_slice %17 {offsets = [2, 0], sizes = [1, 1536], strides = [1, 1]} : vector<3x1536xf32> to vector<1x1536xf32>
    %32 = vector.broadcast %30 : vector<6x1xf32> to vector<6x1536xf32>
    %33 = vector.broadcast %31 : vector<1x1536xf32> to vector<6x1536xf32>
    %34 = arith.mulf %32, %33 : vector<6x1536xf32>
    %35 = arith.addf %29, %34 : vector<6x1536xf32>
    %c0_13 = arith.constant 0 : index
    %c0_14 = arith.constant 0 : index
    %36 = vector.load %arg7[%c0_13, %c0_14] : memref<6x1536xf32, #tpu.memory_space<vmem>>, vector<6x1536xf32>
    tpu.vector_store %arg7[%c0_13, %c0_14], %35 {strides = array<i32>} : memref<6x1536xf32, #tpu.memory_space<vmem>>, vector<6x1536xf32>,
    %c0_15 = arith.constant 0 : index
    %c0_16 = arith.constant 0 : index
    %37 = vector.load %arg4[%c0_15, %c0_16] : memref<6x256xf32, #tpu.memory_space<vmem>>, vector<6x256xf32>
    %c0_17 = arith.constant 0 : index
    %c0_18 = arith.constant 0 : index
    %38 = vector.load %arg5[%c0_17, %c0_18] : memref<6x256xf32, #tpu.memory_space<vmem>>, vector<6x256xf32>
    %39 = arith.subf %37, %38 : vector<6x256xf32>
    %40 = math.absf %39 : vector<6x256xf32>
    %cst_19 = arith.constant 1.000000e+00 : f32
    %41 = vector.broadcast %cst_19 : f32 to vector<6x256xf32>
    %42 = arith.addf %40, %41 : vector<6x256xf32>
    %43 = math.log %42 : vector<6x256xf32>
    %44 = vector.shape_cast %43 : vector<6x256xf32> to vector<1x6x256xf32>
    %cst_20 = arith.constant dense<0.000000e+00> : vector<1xf32>
    %45 = vector.multi_reduction <add>, %44, %cst_20 [1, 2] : vector<1x6x256xf32> to vector<1xf32>
    %46 = vector.shape_cast %45 : vector<1xf32> to vector<1x1x1xf32>
    %47 = vector.extract %46[0, 0, 0] : f32 from vector<1x1x1xf32>
    %cst_21 = arith.constant 6.51041686E-4 : f32
    %48 = arith.mulf %47, %cst_21 : f32
    %49 = tpu.iota {dimensions = array<i32: 1>} : vector<1x2xi32>
    %c0_i32 = arith.constant 0 : i32
    %50 = vector.broadcast %c0_i32 : i32 to vector<1x2xi32>
    %51 = arith.cmpi eq, %49, %50 : vector<1x2xi32>
    %52 = vector.broadcast %48 : f32 to vector<1x2xf32>
    %53 = vector.broadcast %16 : f32 to vector<1x2xf32>
    %54 = arith.select %51, %52, %53 : vector<1x2xi1>, vector<1x2xf32>
    %c0_22 = arith.constant 0 : index
    %c0_23 = arith.constant 0 : index
    %55 = vector.load %arg8[%c0_22, %c0_23] : memref<1x2xf32, #tpu.memory_space<vmem>>, vector<1x2xf32>
    tpu.vector_store %arg8[%c0_22, %c0_23], %54 {strides = array<i32>} : memref<1x2xf32, #tpu.memory_space<vmem>>, vector<1x2xf32>,
    return
  }
  func.func @transform_0(%arg0: i32) -> (i32, i32) {
    %c0_i32 = arith.constant 0 : i32
    %c0_i32_0 = arith.constant 0 : i32
    %c0_i32_1 = arith.constant 0 : i32
    return %c0_i32, %c0_i32_0 : i32, i32
  }
  func.func @transform_1(%arg0: i32) -> (i32, i32, i32) {
    %c0_i32 = arith.constant 0 : i32
    %c0_i32_0 = arith.constant 0 : i32
    %c0_i32_1 = arith.constant 0 : i32
    %c0_i32_2 = arith.constant 0 : i32
    return %c0_i32, %c0_i32_0, %c0_i32_1 : i32, i32, i32
  }
  func.func @transform_2(%arg0: i32) -> (i32, i32) {
    %c0_i32 = arith.constant 0 : i32
    %c0_i32_0 = arith.constant 0 : i32
    %c0_i32_1 = arith.constant 0 : i32
    return %c0_i32, %c0_i32_0 : i32, i32
  }
  func.func @transform_3(%arg0: i32) -> (i32, i32) {
    %c0_i32 = arith.constant 0 : i32
    %c0_i32_0 = arith.constant 0 : i32
    %c0_i32_1 = arith.constant 0 : i32
    return %c0_i32, %c0_i32_0 : i32, i32
  }
  func.func @transform_4(%arg0: i32) -> (i32, i32) {
    %c0_i32 = arith.constant 0 : i32
    %c0_i32_0 = arith.constant 0 : i32
    %c0_i32_1 = arith.constant 0 : i32
    return %c0_i32, %c0_i32_0 : i32, i32
  }
  func.func @transform_5(%arg0: i32) -> (i32, i32) {
    %c0_i32 = arith.constant 0 : i32
    %c0_i32_0 = arith.constant 0 : i32
    %c0_i32_1 = arith.constant 0 : i32
    return %c0_i32, %c0_i32_0 : i32, i32
  }
  func.func @transform_6(%arg0: i32) -> (i32, i32) {
    %c0_i32 = arith.constant 0 : i32
    %c0_i32_0 = arith.constant 0 : i32
    %c0_i32_1 = arith.constant 0 : i32
    return %c0_i32, %c0_i32_0 : i32, i32
  }
  func.func @transform_7(%arg0: i32) -> (i32, i32) {
    %c0_i32 = arith.constant 0 : i32
    %c0_i32_0 = arith.constant 0 : i32
    %c0_i32_1 = arith.constant 0 : i32
    return %c0_i32, %c0_i32_0 : i32, i32
  }
}

</mosaic_0001>

<bundles_post_ra>
// kernel: tpu_custom_call.1
= control target key start
LH: loop header
LB: loop body
LE: loop exit
PB: predicated region body
PF: predicated region fallthrough
CT: control target
= control target key end

     0   :  { %13 = vsyncpa [#allocation3], 0  ;;  %s1233_s0 = inlined_call_operand.vmem [shape: f32[6,3], index: 0, kind: input, shape index: {}]   ;;  %s1234_s1 = inlined_call_operand.hbm [shape: f32[3,4,384], index: 1, kind: input, shape index: {}]   ;;  %s1235_s2 = inlined_call_operand.hbm [shape: f32[3,1536], index: 2, kind: input, shape index: {}]   ;;  %s1236_s3 = inlined_call_operand.vmem [shape: f32[6,256], index: 3, kind: input, shape index: {}]   ;;  %s1237_s4 = inlined_call_operand.hbm [shape: f32[6,256], index: 4, kind: input, shape index: {}]   ;;  %s1238_s5 = inlined_call_operand.hbm [shape: f32[3,384], index: 5, kind: output, shape index: {0}]   ;;  %s1239_s6 = inlined_call_operand.hbm [shape: f32[6,1536], index: 6, kind: output, shape index: {1}]   ;;  %s1240_s7 = inlined_call_operand.hbm [shape: f32[1,2], index: 7, kind: output, shape index: {2}]  }
   0x1   :  { %14 = vsyncpa [#allocation6], 0 }
   0x2   :  { %15 = vsyncpa [#allocation4], 0 }
   0x3   :  { %16 = vsyncpa [#allocation10], 0  ;;  %s910_s24 = smov [#allocation5]   ;;  %s911_s26 = smov [#allocation2]  }
   0x4   :  { %s37_s25 = sshll.u32 %s910_s24, 4  ;;  %s24_s27 = sshll.u32 %s911_s26, 4  ;;  %s38_s25 = int_to_ptr.vmem [resolvable:$true] %s37_s25  ;;  %s961_s27 = int_to_ptr.vmem [resolvable:$true] %s24_s27 }
   0x5   :  { %s770_s30 = scalar_lea.hbm %s1235_s2, 768 }
   0x6   :  { %p771_p0 = scmp.ne.s32.totalorder %s1235_s2, %s770_s30  ;;  %p774_p1 = scmp.lt.u32.totalorder %s770_s30, %s1235_s2 }
   0x8   :  { %p776_p2 = pnand %p774_p1, %p771_p0 }
   0xa   :  { %779 = shalt.err (!%p776_p2)
}
   0xb   :  { %s780_s12 = scalar_lea.vmem %s38_s25, 768  ;;  %p785_p4 = scmp.lt.s32.totalorder %s38_s25, %s38_s25 }
   0xc   :  { %p781_p3 = scmp.ne.s32.totalorder %s38_s25, %s780_s12  ;;  %p786_p5 = scmp.lt.s32.totalorder %s780_s12, %s780_s12 }
   0xe   :  { %p787_p6 = por %p786_p5, %p785_p4 }
  0x10   :  { %p788_p7 = pnand %p787_p6, %p781_p3 }
  0x12   :  { %791 = shalt.err (!%p788_p7)
}
  0x13   :  { %40 = dma.hbm_to_vmem [thread:$0]  %s1235_s2, 768, %s38_s25, [#allocation6]  }
  0x14   :  { %s792_s17 = scalar_lea.hbm %s1234_s1, 576 }
  0x15   :  { %p793_p8 = scmp.ne.s32.totalorder %s1234_s1, %s792_s17  ;;  %p796_p9 = scmp.lt.u32.totalorder %s792_s17, %s1234_s1 }
  0x17   :  { %p798_p10 = pnand %p796_p9, %p793_p8 }
  0x19   :  { %801 = shalt.err (!%p798_p10)
}
  0x1a   :  { %s802_s22 = scalar_lea.vmem %s961_s27, 576  ;;  %p807_p12 = scmp.lt.s32.totalorder %s961_s27, %s961_s27 }
  0x1b   :  { %p803_p11 = scmp.ne.s32.totalorder %s961_s27, %s802_s22  ;;  %p808_p13 = scmp.lt.s32.totalorder %s802_s22, %s802_s22 }
  0x1d   :  { %p809_p0 = por %p808_p13, %p807_p12 }
  0x1f   :  { %p810_p1 = pnand %p809_p0, %p803_p11 }
  0x21   :  { %813 = shalt.err (!%p810_p1)
}
  0x22   :  { %s912_s2 = smov 192   ;;  %s913_s23 = smov 12  }
  0x23   :  { %30 = dma.hbm_to_vmem [thread:$0]  %s1234_s1, 576, %s961_s27, [#allocation3], %s912_s2, %s912_s2, %s913_s23  }
  0x24   :  { %s914_s26 = smov [#allocation7]   ;;  %s814_s8 = scalar_lea.hbm %s1237_s4, 256 }
  0x25   :  { %s49_s28 = sshll.u32 %s914_s26, 4  ;;  %p815_p2 = scmp.ne.s32.totalorder %s1237_s4, %s814_s8  ;;  %s50_s28 = int_to_ptr.vmem [resolvable:$true] %s49_s28 }
  0x26   :  { %p818_p3 = scmp.lt.u32.totalorder %s814_s8, %s1237_s4 }
  0x28   :  { %p820_p4 = pnand %p818_p3, %p815_p2 }
  0x2a   :  { %823 = shalt.err (!%p820_p4)
}
  0x2b   :  { %s824_s13 = scalar_lea.vmem %s50_s28, 256  ;;  %p829_p6 = scmp.lt.s32.totalorder %s50_s28, %s50_s28 }
  0x2c   :  { %p825_p5 = scmp.ne.s32.totalorder %s50_s28, %s824_s13  ;;  %p830_p7 = scmp.lt.s32.totalorder %s824_s13, %s824_s13 }
  0x2e   :  { %p831_p8 = por %p830_p7, %p829_p6 }
  0x30   :  { %p832_p9 = pnand %p831_p8, %p825_p5 }
  0x32   :  { %835 = shalt.err (!%p832_p9)
}
  0x33   :  { %52 = dma.hbm_to_vmem [thread:$0]  %s1237_s4, 256, %s50_s28, [#allocation6]  }
  0x34   :  { %902 = dma.done.wait [#allocation3], 576  }
  0x35   :  { %903 = vsyncadd [#allocation3], 4294966720 }
  0x36   :  { %904 = dma.done.wait [#allocation6], 1024  }
  0x37   :  { %905 = vsyncadd [#allocation6], 4294966272  ;;  %v915_v0 = vmov 0   ;;  %v916_v1 = vmov 2   ;;  %v62_v2 = vld [vmem:[#allocation2] sm:$0xff]  ;;  %v64_v3 = vld [vmem:[#allocation2 + $0xc] sm:$0xff] }
  0x38   :  { %760 = vset.pattern.permute.xlu1 %v915_v0  ;;  %762 = vset.pattern.permute.xlu0 %v916_v1  ;;  %vm77_vm0 = vcmask 1043456   ;;  %v66_v4 = vld [vmem:[#allocation2 + $0x18] sm:$0xff]  ;;  %v71_v5 = vcombine.high %v62_v2, %v62_v2  ;;  %v72_v6 = vcombine.high %v64_v3, %v64_v3  ;;  %v63_v7 = vld [vmem:[#allocation2 + $0x8] sm:$0xf]  ;;  %v65_v8 = vld [vmem:[#allocation2 + $0x14] sm:$0xf] }
  0x39   :  { %v73_v9 = vcombine.high %v66_v4, %v66_v4  ;;  %v1005_v10 = vsel %vm77_vm0, %v62_v2, 0.0  ;;  %v1011_v12 = vsel %vm77_vm0, %v64_v3, 0.0  ;;  %v67_v14 = vld [vmem:[#allocation2 + $0x20] sm:$0xf]  ;;  %v1017_v15 = vsel %vm77_vm0, %v63_v7, 0.0 }
  0x3a   :  { %v1008_v11 = vsel %vm77_vm0, %v71_v5, 0.0  ;;  %v1014_v13 = vsel %vm77_vm0, %v72_v6, 0.0  ;;  %v1020_v16 = vsel %vm77_vm0, %v65_v8, 0.0  ;;  %v1023_v17 = vsel %vm77_vm0, %v66_v4, 0.0  ;;  %v1028_v18 = vld [vmem:[%s1233_s0] sm:$0x3f] }
  0x3b   :  { %v1031_v19 = vsel %vm77_vm0, %v73_v9, 0.0  ;;  %v182_v20 = vadd.f32 %v1011_v12, %v1005_v10  ;;  %v184_v21 = vadd.f32 %v1014_v13, %v1008_v11  ;;  %v666_v22 = vld [vmem:[%s1236_s3] sm:$0x3f]  ;;  %253 = vperm.xlu1 %760, %v1028_v18   ;;  %v1042_v24 = vsel %vm77_vm0, %v67_v14, 0.0  ;;  %v667_v28 = vld [vmem:[%s1236_s3 + $0x8] sm:$0x3f] }
  0x3c   :  { %v668_v23 = vld [vmem:[#allocation7] sm:$0x3f]  ;;  %v186_v27 = vadd.f32 %v1020_v16, %v1017_v15  ;;  %v669_v29 = vld [vmem:[#allocation7 + $0x8] sm:$0x3f]  ;;  %v917_v34 = vmov 1   ;;  %vm680_vm1 = vcmask 1045504  }
  0x3d   :  { %v183_v25 = vadd.f32 %v182_v20, %v1023_v17  ;;  %v185_v26 = vadd.f32 %v184_v21, %v1031_v19  ;;  %v670_v30 = vsub.f32 %v666_v22, %v668_v23  ;;  %v671_v35 = vsub.f32 %v667_v28, %v669_v29  ;;  %s918_s3 = smov [#allocation8]  }
  0x3e   :  { %v187_v31 = vadd.f32 %v186_v27, %v1042_v24  ;;  %v114_v27 = vrot.slane %v1020_v16, 4  ;;  %v79_v28 = vrot.slane %v1005_v10, 4  ;;  %v135_v29 = vrot.slane %v1042_v24, 4  ;;  %s708_s18 = sshll.u32 %s918_s3, 4  ;;  %s709_s18 = int_to_ptr.vmem [resolvable:$true] %s708_s18 }
  0x3f   :  { %v189_v32 = vmul.f32 0.33333334, %v183_v25  ;;  %v190_v33 = vmul.f32 0.33333334, %v185_v26  ;;  %761 = vset.pattern.permute.xlu1 %v917_v34  ;;  %v672_v36 = vand.u32 2147483647, %v670_v30  ;;  %p841_p11 = scmp.lt.s32.totalorder %s709_s18, %s709_s18 }
  0x40   :  { %383 = vperm.xlu1 %761, %v1028_v18   ;;  %v191_v37 = vmul.f32 0.33333334, %v187_v31  ;;  %v673_v39 = vand.u32 2147483647, %v671_v35  ;;  %v86_v30 = vrot.slane %v1008_v11, 4  ;;  %v93_v31 = vrot.slane %v1017_v15, 4 }
  0x41   :  { %v194_v38 = vcombine.low %v189_v32, %v190_v33  ;;  %v674_v40 = vadd.f32 1.0, %v672_v36  ;;  %v100_v32 = vrot.slane %v1011_v12, 4  ;;  %v107_v33 = vrot.slane %v1014_v13, 4  ;;  %s836_s19 = scalar_lea.vmem %s709_s18, 192 }
  0x42   :  { %v197_v42 = vsub.f32 %v63_v7, %v191_v37  ;;  %v675_v44 = vadd.f32 1.0, %v673_v39  ;;  %v199_v48 = vsub.f32 %v65_v8, %v191_v37  ;;  %v201_v60 = vsub.f32 %v67_v14, %v191_v37  ;;  %p837_p10 = scmp.ne.s32.totalorder %s709_s18, %s836_s19  ;;  %p842_p12 = scmp.lt.s32.totalorder %s836_s19, %s836_s19 }
  0x43   :  { %v196_v41 = vsub.f32 %v62_v2, %v194_v38  ;;  %v198_v43 = vsub.f32 %v64_v3, %v194_v38  ;;  %766 = vlog2.f32 %v674_v40  ;;  %v200_v49 = vsub.f32 %v66_v4, %v194_v38 }
  0x44   :  { %v203_v46 = vand.u32 2147483647, %v197_v42  ;;  %768 = vlog2.f32 %v675_v44  ;;  %v205_v56 = vand.u32 2147483647, %v199_v48  ;;  %v207_v4 = vand.u32 2147483647, %v201_v60  ;;  %p843_p13 = por %p842_p12, %p841_p11 }
  0x45   :  { %v202_v45 = vand.u32 2147483647, %v196_v41  ;;  %v204_v47 = vand.u32 2147483647, %v198_v43  ;;  %v206_v57 = vand.u32 2147483647, %v200_v49  ;;  %v115_v34 = vadd.f32 %v114_v27, %v1020_v16 }
  0x46   :  { %v220_v54 = vsel %vm77_vm0, %v203_v46, 0.0  ;;  %v226_v1 = vsel %vm77_vm0, %v205_v56, 0.0  ;;  %v232_v14 = vsel %vm77_vm0, %v207_v4, 0.0  ;;  %v80_v35 = vadd.f32 %v79_v28, %v1005_v10  ;;  %p844_p0 = pnand %p843_p13, %p837_p10 }
  0x47   :  { %v211_v50 = vcombine.high %v202_v45, %v202_v45  ;;  %v217_v51 = vsel %vm77_vm0, %v202_v45, 0.0  ;;  %v212_v52 = vcombine.high %v204_v47, %v204_v47  ;;  %v222_v58 = vsel %vm77_vm0, %v204_v47, 0.0 }
  0x48   :  { %v213_v0 = vcombine.high %v206_v57, %v206_v57  ;;  %v228_v5 = vsel %vm77_vm0, %v206_v57, 0.0  ;;  %v128_v36 = vrot.slane %v1031_v19, 4  ;;  %v136_v37 = vadd.f32 %v135_v29, %v1042_v24 }
  0x49   :  { %v218_v53 = vsel %vm77_vm0, %v211_v50, 0.0  ;;  %v224_v61 = vsel %vm77_vm0, %v212_v52, 0.0  ;;  %v87_v38 = vadd.f32 %v86_v30, %v1008_v11  ;;  %v94_v39 = vadd.f32 %v93_v31, %v1017_v15 }
  0x4a   :  { %v219_v55 = vadd.f32 %v218_v53, %v217_v51  ;;  %v230_v7 = vsel %vm77_vm0, %v213_v0, 0.0  ;;  %v101_v40 = vadd.f32 %v100_v32, %v1011_v12  ;;  %v116_v41 = vrot.slane %v115_v34, 2 }
  0x4b   :  { %v108_v42 = vadd.f32 %v107_v33, %v1014_v13  ;;  %v81_v16 = vrot.slane %v80_v35, 2  ;;  %v129_v10 = vadd.f32 %v128_v36, %v1031_v19  ;;  %v137_v44 = vrot.slane %v136_v37, 2 }
  0x4c   :  { %v221_v59 = vadd.f32 %v220_v54, %v219_v55  ;;  %v88_v45 = vrot.slane %v87_v38, 2  ;;  %v95_v46 = vrot.slane %v94_v39, 2  ;;  %v117_v48 = vadd.f32 %v116_v41, %v115_v34 }
  0x4d   :  { %v767_v63 = vpop.eup %766  ;;  %v82_v47 = vadd.f32 %v81_v16, %v80_v35  ;;  %v102_v49 = vrot.slane %v101_v40, 2  ;;  %v109_v11 = vrot.slane %v108_v42, 2  ;;  %v130_v51 = vrot.slane %v129_v10, 2 }
  0x4e   :  { %v223_v62 = vadd.f32 %v222_v58, %v221_v59  ;;  %v769_v2 = vpop.eup %768  ;;  %v677_v8 = vmul.f32 0.6931472, %v767_v63  ;;  %v89_v24 = vadd.f32 %v88_v45, %v87_v38  ;;  %v138_v12 = vadd.f32 %v137_v44, %v136_v37 }
  0x4f   :  { %v679_v9 = vmul.f32 0.6931472, %v769_v2  ;;  %v83_v50 = vrot.slane %v82_v47, 1  ;;  %v103_v53 = vadd.f32 %v102_v49, %v101_v40  ;;  %v110_v13 = vadd.f32 %v109_v11, %v108_v42 }
  0x50   :  { %v225_v3 = vadd.f32 %v224_v61, %v223_v62  ;;  %v681_v22 = vsel %vm680_vm1, %v677_v8, 0.0  ;;  %v90_v52 = vrot.slane %v89_v24, 1  ;;  %v96_v54 = vadd.f32 %v95_v46, %v94_v39 }
  0x51   :  { %v682_v23 = vsel %vm680_vm1, %v679_v9, 0.0  ;;  %v131_v56 = vadd.f32 %v130_v51, %v129_v10  ;;  %v104_v57 = vrot.slane %v103_v53, 1  ;;  %v111_v58 = vrot.slane %v110_v13, 1 }
  0x52   :  { %v227_v6 = vadd.f32 %v226_v1, %v225_v3  ;;  %v683_v26 = vadd.f32 %v682_v23, %v681_v22  ;;  %v91_v19 = vadd.f32 %v90_v52, %v89_v24  ;;  %v118_v59 = vrot.slane %v117_v48, 1 }
  0x53   :  { %v139_v61 = vrot.slane %v138_v12, 1  ;;  %v105_v63 = vadd.f32 %v104_v57, %v103_v53  ;;  %v112_v0 = vadd.f32 %v111_v58, %v110_v13  ;;  %v132_v2 = vrot.slane %v131_v56, 1 }
  0x54   :  { %v229_v20 = vadd.f32 %v228_v5, %v227_v6  ;;  %v142_v62 = vmul.f32 0.25, %v91_v19  ;;  %v97_v3 = vrot.slane %v96_v54, 1  ;;  %v119_v4 = vadd.f32 %v118_v59, %v117_v48 }
  0x55   :  { %v140_v6 = vadd.f32 %v139_v61, %v138_v12  ;;  %v133_v8 = vadd.f32 %v132_v2, %v131_v56  ;;  %v144_v9 = vmul.f32 0.25, %v105_v63  ;;  %vm163_vm2 = vcmask 1041409  }
  0x56   :  { %v231_v21 = vadd.f32 %v230_v7, %v229_v20  ;;  %v145_v20 = vmul.f32 0.25, %v112_v0  ;;  %vm165_vm3 = vcmask 1045509   ;;  %vm168_vm4 = vcmask 1042434  }
  0x57   :  { %v149_v22 = vmul.f32 0.25, %v140_v6  ;;  %vm170_vm5 = vcmask 1046534  }
  0x58   :  { %v233_v25 = vadd.f32 %v232_v14, %v231_v21  ;;  %v98_v14 = vadd.f32 %v97_v3, %v96_v54  ;;  %v146_v21 = vmul.f32 0.25, %v119_v4 }
  0x59   :  { %v175_v29 = vrot.slane %v149_v22, 6 }
  0x5a   :  { %234 = vadd.xlane.f32.xlu0 %v233_v25  ;;  %v148_v25 = vmul.f32 0.25, %v133_v8  ;;  %v143_v27 = vmul.f32 0.25, %v98_v14  ;;  %v172_v28 = vrot.slane %v146_v21, 7 }
  0x5c   :  { %v173_v32 = vsel %vm163_vm2, %v172_v28, %v143_v27 }
  0x5d   :  { %v174_v35 = vsel %vm165_vm3, %v172_v28, %v173_v32 }
  0x5e   :  { %684 = vadd.xlane.f32.xlu0 %v683_v26  ;;  %v160_v26 = vcombine.low %v144_v9, %v145_v20  ;;  %v176_v37 = vsel %vm168_vm4, %v175_v29, %v174_v35 }
  0x5f   :  { %v177_v39 = vsel %vm170_vm5, %v175_v29, %v176_v37 }
  0x60   :  { %v162_v31 = vrot.slane %v160_v26, 7  ;;  %181 = vst [vmem:[#allocation8 + $0x8] sm:$0x7] %v177_v39 }
  0x74   :  { %519 = vperm.xlu0 %762, %v1028_v18   ;;  %v121_v18 = vrot.slane %v1023_v17, 4 }
  0x76   :  { %v122_v43 = vadd.f32 %v121_v18, %v1023_v17  ;;  %v84_v17 = vadd.f32 %v83_v50, %v82_v47  ;;  %v262_v18 = vlaneseq }
  0x78   :  { %v123_v15 = vrot.slane %v122_v43, 2  ;;  %v141_v60 = vmul.f32 0.25, %v84_v17  ;;  %v263_v41 = vshrl.u32 %v262_v18, 7 }
  0x7a   :  { %v124_v55 = vadd.f32 %v123_v15, %v122_v43  ;;  %v159_v5 = vcombine.low %v141_v60, %v142_v62 }
  0x7c   :  { %v125_v1 = vrot.slane %v124_v55, 1  ;;  %v164_v33 = vsel %vm163_vm2, %v162_v31, %v159_v5 }
  0x7d   :  { %v166_v36 = vsel %vm165_vm3, %v162_v31, %v164_v33 }
  0x7e   :  { %v126_v7 = vadd.f32 %v125_v1, %v124_v55 }
  0x80   :  { %v147_v23 = vmul.f32 0.25, %v126_v7 }
  0x82   :  { %v161_v30 = vcombine.low %v147_v23, %v148_v25 }
  0x84   :  { %v167_v34 = vrot.slane %v161_v30, 6 }
  0x86   :  { %v169_v38 = vsel %vm168_vm4, %v167_v34, %v166_v36 }
  0x87   :  { %v171_v40 = vsel %vm170_vm5, %v167_v34, %v169_v38 }
  0x88   :  { %180 = vst [vmem:[#allocation8] sm:$0x77] %v171_v40 }
  0x89   :  { %847 = shalt.err (!%p844_p0)
}
  0x8a   :  { %s848_s22 = scalar_lea.hbm %s1238_s5, 192 }
  0x8b   :  { %p849_p1 = scmp.ne.s32.totalorder %s1238_s5, %s848_s22  ;;  %p852_p2 = scmp.lt.u32.totalorder %s848_s22, %s1238_s5 }
  0x8d   :  { %p854_p3 = pnand %p852_p2, %p849_p1 }
  0x8f   :  { %857 = shalt.err (!%p854_p3)
}
  0x90   :  { %711 = dma.vmem_to_hbm [thread:$0]  %s709_s18, 192, %s1238_s5, [#allocation4]   ;;  %v268_v42 = vsub.s32 4, %v263_v41  ;;  %v1094_v43 = vld [vmem:[#allocation5] sm:$0x77]  ;;  %v392_v10 = vsub.s32 5, %v263_v41 }
  0x91   :  { %v1096_v16 = vld [vmem:[#allocation5 + $0x8] sm:$0x77]  ;;  %v1098_v44 = vld [vmem:[#allocation5 + $0x10] sm:$0x77]  ;;  %v1100_v45 = vld [vmem:[#allocation5 + $0x18] sm:$0x77] }
  0x92   :  { %v1102_v46 = vld [vmem:[#allocation5 + $0x20] sm:$0x77]  ;;  %v1104_v47 = vld [vmem:[#allocation5 + $0x28] sm:$0x77]  ;;  %v269_v48 = vrot.slane %v1094_v43, %v268_v42  ;;  %v277_v24 = vrot.slane %v1096_v16, %v268_v42  ;;  %v285_v49 = vrot.slane %v1098_v44, %v268_v42  ;;  %v293_v11 = vrot.slane %v1100_v45, %v268_v42  ;;  %s919_s5 = smov [#allocation9]  }
  0x93   :  { %v301_v50 = vrot.slane %v1102_v46, %v268_v42  ;;  %v264_v15 = vsub.s32 0, %v263_v41  ;;  %v309_v51 = vrot.slane %v1104_v47, %v268_v42  ;;  %v393_v12 = vrot.slane %v1094_v43, %v392_v10  ;;  %s718_s29 = sshll.u32 %s919_s5, 4  ;;  %s719_s29 = int_to_ptr.vmem [resolvable:$true] %s718_s29 }
  0x94   :  { %v388_v52 = vsub.s32 1, %v263_v41  ;;  %v528_v53 = vsub.s32 6, %v263_v41  ;;  %v401_v17 = vrot.slane %v1096_v16, %v392_v10  ;;  %v409_v55 = vrot.slane %v1098_v44, %v392_v10  ;;  %s858_s30 = scalar_lea.vmem %s719_s29, 1536  ;;  %p863_p5 = scmp.lt.s32.totalorder %s719_s29, %s719_s29 }
  0x95   :  { %v1113_v13 = vrot.slane %v269_v48, %v264_v15  ;;  %v1115_v54 = vrot.slane %v277_v24, %v264_v15  ;;  %v1119_v56 = vrot.slane %v285_v49, %v264_v15  ;;  %v1121_v19 = vrot.slane %v293_v11, %v264_v15  ;;  %p859_p4 = scmp.ne.s32.totalorder %s719_s29, %s858_s30  ;;  %p864_p6 = scmp.lt.s32.totalorder %s858_s30, %s858_s30 }
  0x96   :  { %v1123_v57 = vrot.slane %v301_v50, %v264_v15  ;;  %v417_v58 = vrot.slane %v1100_v45, %v392_v10  ;;  %v1126_v59 = vrot.slane %v309_v51, %v264_v15  ;;  %v425_v60 = vrot.slane %v1102_v46, %v392_v10 }
  0x97   :  { %v433_v61 = vrot.slane %v1104_v47, %v392_v10  ;;  %v1130_v62 = vrot.slane %v393_v12, %v388_v52  ;;  %v529_v63 = vrot.slane %v1094_v43, %v528_v53  ;;  %v537_v0 = vrot.slane %v1096_v16, %v528_v53  ;;  %p865_p7 = por %p864_p6, %p863_p5 }
  0x98   :  { %v545_v1 = vrot.slane %v1098_v44, %v528_v53  ;;  %v553_v2 = vrot.slane %v1100_v45, %v528_v53  ;;  %v1136_v3 = vrot.slane %v401_v17, %v388_v52  ;;  %v1138_v4 = vrot.slane %v409_v55, %v388_v52 }
  0x99   :  { %v561_v5 = vrot.slane %v1102_v46, %v528_v53  ;;  %v569_v6 = vrot.slane %v1104_v47, %v528_v53  ;;  %v1142_v7 = vrot.slane %v417_v58, %v388_v52  ;;  %v524_v8 = vsub.s32 2, %v263_v41  ;;  %p866_p8 = pnand %p865_p7, %p859_p4 }
  0x9a   :  { %v265_v9 = vrot.slane %v1094_v43, %v264_v15  ;;  %v273_v20 = vrot.slane %v1096_v16, %v264_v15  ;;  %v1146_v14 = vrot.slane %v425_v60, %v388_v52  ;;  %v1148_v21 = vrot.slane %v433_v61, %v388_v52 }
  0x9b   :  { %v281_v22 = vrot.slane %v1098_v44, %v264_v15  ;;  %v289_v23 = vrot.slane %v1100_v45, %v264_v15  ;;  %v1152_v25 = vrot.slane %v529_v63, %v524_v8  ;;  %v1154_v26 = vrot.slane %v537_v0, %v524_v8 }
  0x9c   :  { %v1156_v27 = vrot.slane %v545_v1, %v524_v8  ;;  %v1158_v28 = vrot.slane %v553_v2, %v524_v8  ;;  %v1160_v29 = vrot.slane %v561_v5, %v524_v8  ;;  %v1162_v30 = vrot.slane %v569_v6, %v524_v8 }
  0x9d   :  { %v297_v31 = vrot.slane %v1102_v46, %v264_v15  ;;  %v305_v32 = vrot.slane %v1104_v47, %v264_v15  ;;  %v325_v33 = vrot.slane %v265_v9, %v264_v15  ;;  %v333_v34 = vrot.slane %v273_v20, %v264_v15 }
  0x9e   :  { %v389_v35 = vrot.slane %v1094_v43, %v388_v52  ;;  %v397_v36 = vrot.slane %v1096_v16, %v388_v52  ;;  %v405_v37 = vrot.slane %v1098_v44, %v388_v52  ;;  %v413_v38 = vrot.slane %v1100_v45, %v388_v52 }
  0x9f   :  { %v421_v39 = vrot.slane %v1102_v46, %v388_v52  ;;  %v429_v40 = vrot.slane %v1104_v47, %v388_v52  ;;  %v525_v42 = vrot.slane %v1094_v43, %v524_v8  ;;  %v533_v10 = vrot.slane %v1096_v16, %v524_v8 }
  0xa0   :  { %v541_v48 = vrot.slane %v1098_v44, %v524_v8  ;;  %v549_v24 = vrot.slane %v1100_v45, %v524_v8  ;;  %v341_v49 = vrot.slane %v281_v22, %v264_v15  ;;  %v349_v11 = vrot.slane %v289_v23, %v264_v15 }
  0xa1   :  { %v557_v50 = vrot.slane %v1102_v46, %v524_v8  ;;  %v565_v51 = vrot.slane %v1104_v47, %v524_v8  ;;  %v357_v12 = vrot.slane %v297_v31, %v264_v15  ;;  %v365_v53 = vrot.slane %v305_v32, %v264_v15 }
  0xa2   :  { %v449_v17 = vrot.slane %v389_v35, %v388_v52  ;;  %v457_v55 = vrot.slane %v397_v36, %v388_v52  ;;  %v465_v58 = vrot.slane %v405_v37, %v388_v52  ;;  %v473_v60 = vrot.slane %v413_v38, %v388_v52 }
  0xa3   :  { %v481_v61 = vrot.slane %v421_v39, %v388_v52  ;;  %v489_v43 = vrot.slane %v429_v40, %v388_v52  ;;  %v1178_v16 = vrot.slane %v525_v42, %v524_v8  ;;  %v1180_v44 = vrot.slane %v533_v10, %v524_v8 }
  0xa4   :  { %v1182_v45 = vrot.slane %v541_v48, %v524_v8  ;;  %v1184_v0 = vrot.slane %v549_v24, %v524_v8  ;;  %v617_v1 = vrot.slane %v557_v50, %v524_v8  ;;  %v625_v15 = vrot.slane %v565_v51, %v524_v8 }
  0xba   :  { %v254_v41 = vpop.permute.xlu1 %253 }
  0xbb   :  { %v371_v47 = vmul.f32 %v1113_v13, %v254_v41  ;;  %v373_v5 = vmul.f32 %v1115_v54, %v254_v41  ;;  %v375_v6 = vmul.f32 %v1119_v56, %v254_v41  ;;  %v377_v52 = vmul.f32 %v1121_v19, %v254_v41 }
  0xbc   :  { %v379_v9 = vmul.f32 %v1123_v57, %v254_v41  ;;  %v381_v22 = vmul.f32 %v1126_v59, %v254_v41  ;;  %v370_v23 = vmul.f32 %v325_v33, %v254_v41  ;;  %v372_v31 = vmul.f32 %v333_v34, %v254_v41 }
  0xbd   :  { %v374_v35 = vmul.f32 %v341_v49, %v254_v41  ;;  %v376_v36 = vmul.f32 %v349_v11, %v254_v41  ;;  %v378_v13 = vmul.f32 %v357_v12, %v254_v41  ;;  %v380_v37 = vmul.f32 %v365_v53, %v254_v41 }
  0xbf   :  { %v384_v2 = vpop.permute.xlu1 %383 }
  0xc0   :  { %v495_v54 = vmul.f32 %v1130_v62, %v384_v2  ;;  %v497_v56 = vmul.f32 %v1136_v3, %v384_v2  ;;  %v499_v19 = vmul.f32 %v1138_v4, %v384_v2  ;;  %v501_v57 = vmul.f32 %v1142_v7, %v384_v2 }
  0xc1   :  { %v503_v39 = vmul.f32 %v1146_v14, %v384_v2  ;;  %v505_v59 = vmul.f32 %v1148_v21, %v384_v2  ;;  %v494_v40 = vmul.f32 %v449_v17, %v384_v2  ;;  %v496_v42 = vmul.f32 %v457_v55, %v384_v2 }
  0xc2   :  { %v498_v10 = vmul.f32 %v465_v58, %v384_v2  ;;  %v500_v41 = vmul.f32 %v473_v60, %v384_v2  ;;  %v502_v48 = vmul.f32 %v481_v61, %v384_v2  ;;  %v504_v24 = vmul.f32 %v489_v43, %v384_v2 }
  0xc3   :  { %v507_v11 = vadd.f32 %v495_v54, %v371_v47  ;;  %v509_v3 = vadd.f32 %v497_v56, %v373_v5  ;;  %v511_v50 = vadd.f32 %v499_v19, %v375_v6  ;;  %v513_v4 = vadd.f32 %v501_v57, %v377_v52 }
  0xc4   :  { %v515_v51 = vadd.f32 %v503_v39, %v379_v9  ;;  %v517_v7 = vadd.f32 %v505_v59, %v381_v22  ;;  %v506_v53 = vadd.f32 %v494_v40, %v370_v23  ;;  %v508_v21 = vadd.f32 %v496_v42, %v372_v31 }
  0xc5   :  { %v512_v17 = vadd.f32 %v500_v41, %v376_v36  ;;  %v514_v55 = vadd.f32 %v502_v48, %v378_v13  ;;  %v516_v58 = vadd.f32 %v504_v24, %v380_v37 }
  0xe7   :  { %v235_v63 = vpop.xlane.xlu0 %234 }
  0xe8   :  { %v236_v46 = vrot.slane %v235_v63, 4 }
  0xea   :  { %v237_v20 = vadd.f32 %v236_v46, %v235_v63  ;;  %v510_v46 = vadd.f32 %v498_v10, %v374_v35 }
  0xeb   :  { %v685_v32 = vpop.xlane.xlu0 %684 }
  0xec   :  { %v238_v8 = vrot.slane %v237_v20, 2  ;;  %v686_v38 = vrot.slane %v685_v32, 4 }
  0xee   :  { %v687_v33 = vadd.f32 %v686_v38, %v685_v32  ;;  %v239_v34 = vadd.f32 %v238_v8, %v237_v20 }
  0xf0   :  { %v688_v49 = vrot.slane %v687_v33, 2  ;;  %v240_v62 = vrot.slane %v239_v34, 1 }
  0xf2   :  { %v241_v12 = vadd.f32 %v240_v62, %v239_v34  ;;  %v689_v14 = vadd.f32 %v688_v49, %v687_v33 }
  0xf3   :  { %v520_v63 = vpop.permute.xlu0 %519 }
  0xf4   :  { %745 = vpush %v241_v12  ;;  %v690_v60 = vrot.slane %v689_v14, 1  ;;  %v631_v61 = vmul.f32 %v1152_v25, %v520_v63  ;;  %v633_v43 = vmul.f32 %v1154_v26, %v520_v63  ;;  %v635_v47 = vmul.f32 %v1156_v27, %v520_v63 }
  0xf5   :  { %v637_v2 = vmul.f32 %v1158_v28, %v520_v63  ;;  %v639_v5 = vmul.f32 %v1160_v29, %v520_v63  ;;  %v641_v6 = vmul.f32 %v1162_v30, %v520_v63  ;;  %v630_v52 = vmul.f32 %v1178_v16, %v520_v63 }
  0xf6   :  { %v691_v9 = vadd.f32 %v690_v60, %v689_v14  ;;  %v632_v20 = vmul.f32 %v1180_v44, %v520_v63  ;;  %v634_v22 = vmul.f32 %v1182_v45, %v520_v63  ;;  %v636_v23 = vmul.f32 %v1184_v0, %v520_v63 }
  0xf7   :  { %v638_v25 = vmul.f32 %v617_v1, %v520_v63  ;;  %v640_v31 = vmul.f32 %v625_v15, %v520_v63  ;;  %v642_v26 = vadd.f32 %v630_v52, %v506_v53  ;;  %v643_v32 = vadd.f32 %v631_v61, %v507_v11 }
  0xf8   :  { %747 = vpush %v691_v9  ;;  %v644_v27 = vadd.f32 %v632_v20, %v508_v21  ;;  %v645_v28 = vadd.f32 %v633_v43, %v509_v3  ;;  %v646_v29 = vadd.f32 %v634_v22, %v510_v46  ;;  %v647_v30 = vadd.f32 %v635_v47, %v511_v50 }
  0xf9   :  { %v648_v35 = vadd.f32 %v636_v23, %v512_v17  ;;  %v649_v16 = vadd.f32 %v637_v2, %v513_v4  ;;  %v650_v36 = vadd.f32 %v638_v25, %v514_v55  ;;  %v651_v13 = vadd.f32 %v639_v5, %v515_v51  ;;  %654 = vst [vmem:[#allocation9] sm:$0x3f] %v642_v26 }
  0xfa   :  { %655 = vst [vmem:[#allocation9 + $0x8] sm:$0x3f] %v643_v32  ;;  %v652_v44 = vadd.f32 %v640_v31, %v516_v58  ;;  %v653_v45 = vadd.f32 %v641_v6, %v517_v7  ;;  %656 = vst [vmem:[#allocation9 + $0x10] sm:$0x3f] %v644_v27 }
  0xfb   :  { %657 = vst [vmem:[#allocation9 + $0x18] sm:$0x3f] %v645_v28  ;;  %658 = vst [vmem:[#allocation9 + $0x20] sm:$0x3f] %v646_v29 }
  0xfc   :  { %659 = vst [vmem:[#allocation9 + $0x28] sm:$0x3f] %v647_v30  ;;  %660 = vst [vmem:[#allocation9 + $0x30] sm:$0x3f] %v648_v35 }
  0xfd   :  { %661 = vst [vmem:[#allocation9 + $0x38] sm:$0x3f] %v649_v16  ;;  %662 = vst [vmem:[#allocation9 + $0x40] sm:$0x3f] %v650_v36 }
  0xfe   :  { %663 = vst [vmem:[#allocation9 + $0x48] sm:$0x3f] %v651_v13  ;;  %664 = vst [vmem:[#allocation9 + $0x50] sm:$0x3f] %v652_v44 }
  0xff   :  { %665 = vst [vmem:[#allocation9 + $0x58] sm:$0x3f] %v653_v45 }
 0x100   :  { %869 = shalt.err (!%p866_p8)
}
 0x101   :  { %s870_s10 = scalar_lea.hbm %s1239_s6, 1536 }
 0x102   :  { %p871_p9 = scmp.ne.s32.totalorder %s1239_s6, %s870_s10  ;;  %p874_p10 = scmp.lt.u32.totalorder %s870_s10, %s1239_s6 }
 0x104   :  { %p876_p11 = pnand %p874_p10, %p871_p9 }
 0x106   :  { %879 = shalt.err (!%p876_p11)
}
 0x107   :  { %721 = dma.vmem_to_hbm [thread:$0]  %s719_s29, 1536, %s1239_s6, [#allocation10]   ;;  %v695_v0 = vand.u32 127, %v262_v18  ;;  %vm700_vm7 = vcmask 8192  }
 0x108   :  { %s920_s0 = smov [#allocation11]  }
 0x109   :  { %s728_s17 = sshll.u32 %s920_s0, 4  ;;  %vm696_vm6 = vcmp.eq.s32.totalorder %v695_v0, 0  ;;  %s729_s17 = int_to_ptr.vmem [resolvable:$true] %s728_s17 }
 0x10a   :  { %s880_s18 = scalar_lea.vmem %s729_s17, 16  ;;  %s884_s19 = scalar_lea.vmem %s729_s17, 32 }
 0x10b   :  { %p881_p12 = scmp.ne.s32.totalorder %s729_s17, %s880_s18  ;;  %p885_p13 = scmp.lt.s32.totalorder %s729_s17, %s729_s17 }
 0x10c   :  { %p886_p0 = scmp.lt.s32.totalorder %s884_s19, %s880_s18 }
 0x10e   :  { %p887_p1 = por %p886_p0, %p885_p13 }
 0x110   :  { %p888_p2 = pnand %p887_p1, %p881_p12 }
 0x125   :  { %s746_s14 = spop %745 }
 0x126   :  { %s243_s15 = smul.f32 0.00021701389, %s746_s14 }
 0x128   :  { %v698_v1 = vstv %s243_s15 }
 0x129   :  { %s748_s16 = spop %747 }
 0x12a   :  { %s693_s3 = smul.f32 0.0006510417, %s748_s16 }
 0x12c   :  { %v697_v15 = vstv %s693_s3 }
 0x12d   :  { %v699_v37 = vsel %vm696_vm6, %v697_v15, %v698_v1 }
 0x12e   :  { %701 = vst.msk [vmem:[#allocation11] sm:$0x1] %vm700_vm7, %v699_v37 }
 0x12f   :  { %891 = shalt.err (!%p888_p2)
}
 0x130   :  { %s892_s21 = scalar_lea.hbm %s1240_s7, 16 }
 0x131   :  { %p893_p3 = scmp.ne.s32.totalorder %s1240_s7, %s892_s21  ;;  %p896_p4 = scmp.lt.u32.totalorder %s892_s21, %s1240_s7 }
 0x133   :  { %p898_p5 = pnand %p896_p4, %p893_p3 }
 0x135   :  { %901 = shalt.err (!%p898_p5)
}
 0x136   :  { %731 = dma.vmem_to_hbm [thread:$0]  %s729_s17, 16, %s1240_s7, [#allocation10]  }
 0x137   :  { %906 = dma.done.wait [#allocation4], 192  }
 0x138   :  { %907 = vsyncadd [#allocation4], 4294967104 }
 0x139   :  { %908 = dma.done.wait [#allocation10], 1552  }
 0x13a   :  { %909 = vsyncadd [#allocation10], 4294965744 }
 0x13b   :  { %741 = vsyncpa [#allocation3], 1 }
 0x13c   :  { %742 = vsyncpa [#allocation6], 1 }
 0x13d   :  { %743 = vsyncpa [#allocation4], 1 }
 0x13e   :  { %744 = vsyncpa [#allocation10], 1 }

</bundles_post_ra>
